<compile_context>
chip_gen: v7x
topology: tpu7x:2x2x1
jax: 0.10.0
libtpu: 0.0.40
codegen_flags: <defaults>
</compile_context>

<pallas_src>
import functools
from typing import NamedTuple

import jax
import jax.numpy as jnp
from jax import lax
from jax.experimental import pallas as pl
from jax.experimental.pallas import tpu as pltpu


# ----------------------------- helpers ------------------------------------- #

def _round_up(n, m):
    return ((n + m - 1) // m) * m


@functools.lru_cache(maxsize=1)
def _tpu_vmem_bytes():
    try:
        return int(pltpu.get_tpu_info().vmem_capacity_bytes)
    except Exception:
        return 64 << 20  # assume smallest (v7x-class) if the query fails


def _is_small_vmem():
    return _tpu_vmem_bytes() < (100 << 20)


def _default_tiles():
    # (bm, tn, tk, tk_in)
    if _is_small_vmem():                 # v7x-class: 64 MiB VMEM per TC
        return 256, 512, 512, 512
    return 512, 1024, 1024, 1024         # v5e / v6e: 128 MiB VMEM


def _pick_tile(dim, requested, prefer=256, align=128):
    """Largest multiple of `prefer` (falling back to `align`) <= requested
    that divides dim.  dim is always a multiple of 128 here."""
    for a in (prefer, align):
        t = (min(requested, dim) // a) * a
        while t >= a:
            if dim % t == 0:
                return t
            t -= a
    return dim


def _vmem_limit_bytes(tile_bytes):
    # Leave ~25% of physical VMEM for Mosaic internal scratch / spill.
    cap = (_tpu_vmem_bytes() * 3) // 4
    want = 2 * tile_bytes + (16 << 20)
    return int(max(32 << 20, min(want, cap)))


# ----------------------------- parameters ---------------------------------- #

class SAEParams(NamedTuple):
    W: jax.Array       # (d_in_p, d_hidden_p) compute dtype, zero padded
    Wt: jax.Array      # (d_hidden_p, d_in_p)  W.T, materialized once
    b_enc: jax.Array   # (1, d_hidden_p) float32
    b_dec: jax.Array   # (1, d_in_p)     float32
    d_in: int
    d_hidden: int


def prepare_params(W, b_enc, b_dec, *, compute_dtype=jnp.bfloat16):
    """Pad / cast / transpose the weights ONCE (hoisted out of the forward)."""
    d_in, d_hidden = W.shape
    d_in_p = _round_up(d_in, 128)
    d_hidden_p = _round_up(d_hidden, 128)
    cdt = jnp.dtype(compute_dtype)
    W_p = jnp.zeros((d_in_p, d_hidden_p), jnp.float32)
    W_p = W_p.at[:d_in, :d_hidden].set(W.astype(jnp.float32))
    b_enc_p = jnp.zeros((1, d_hidden_p), jnp.float32)
    b_enc_p = b_enc_p.at[0, :d_hidden].set(b_enc.astype(jnp.float32))
    b_dec_p = jnp.zeros((1, d_in_p), jnp.float32)
    b_dec_p = b_dec_p.at[0, :d_in].set(b_dec.astype(jnp.float32))
    return SAEParams(W_p.astype(cdt), W_p.T.astype(cdt), b_enc_p, b_dec_p,
                     d_in, d_hidden)


# ----------------------------- kernels ------------------------------------- #

def _encode_kernel(x_ref, w_ref, b_enc_ref, f_ref, tmax_ref, acc_ref):
    # f = relu(x @ W + b_enc), K-tiled over d_in (grid axis 2, "arbitrary")
    # with an f32 accumulator; also emits this (i, j) tile's max (used by the
    # batch-top-k threshold search, so no extra XLA pass over f is needed).
    kd = pl.program_id(2)

    @pl.when(kd == 0)
    def _():
        acc_ref[...] = jnp.zeros_like(acc_ref)

    acc_ref[...] += jnp.dot(x_ref[...], w_ref[...],
                            preferred_element_type=jnp.float32)

    @pl.when(kd == pl.num_programs(2) - 1)
    def _():
        f = jnp.maximum(acc_ref[...] + b_enc_ref[...], 0.0)
        f_ref[...] = f.astype(f_ref.dtype)
        m = jnp.max(jnp.max(f, axis=1, keepdims=True), axis=0, keepdims=True)
        tmax_ref[...] = jnp.broadcast_to(m, tmax_ref.shape)


def _count_ge_kernel(nrows_ref, thr_ref, f_ref, cnt_ref):
    # For each threshold t_j (SMEM), count elements of f (valid batch rows
    # only) with f >= t_j; accumulate into the resident (1, T) int32 output.
    first = jnp.logical_and(pl.program_id(0) == 0, pl.program_id(1) == 0)

    @pl.when(first)
    def _():
        cnt_ref[...] = jnp.zeros_like(cnt_ref)

    bm = f_ref.shape[0]
    row = pl.program_id(0) * bm + lax.broadcasted_iota(jnp.int32, (bm, 1), 0)
    valid = row < nrows_ref[0]
    # Padded batch rows are replaced by -1 so they never count (thresholds
    # are >= 0 because f = relu(...)).  Compare in f32 (v5e has no bf16 VPU).
    f = jnp.where(valid, f_ref[...].astype(jnp.float32), -1.0)

    T = cnt_ref.shape[1]
    col = lax.broadcasted_iota(jnp.int32, (1, T), 1)

    def body(j, acc):
        t = thr_ref[j]
        hits = jnp.where(f >= t, 1.0, 0.0)
        s = jnp.sum(jnp.sum(hits, axis=1, keepdims=True), axis=0,
                    keepdims=True)                      # (1, 1)
        return acc + jnp.where(col == j, s, 0.0)

    partial = lax.fori_loop(0, T, body, jnp.zeros((1, T), jnp.float32))
    cnt_ref[...] = cnt_ref[...] + partial.astype(jnp.int32)


def _decode_kernel_f32out(tau_ref, f_ref, wt_ref, b_dec_ref, recon_ref,
                          ftopk_ref):
    # Batch-topk masking fused with the decoder matmul; recon (f32) is the
    # accumulator itself (no extra VMEM scratch).
    kk = pl.program_id(1)

    @pl.when(kk == 0)
    def _():
        recon_ref[...] = jnp.broadcast_to(b_dec_ref[...], recon_ref.shape)

    tau = tau_ref[0]
    f = f_ref[...].astype(jnp.float32)
    f_topk = jnp.where(f >= tau, f, 0.0)
    ftopk_ref[...] = f_topk.astype(ftopk_ref.dtype)
    recon_ref[...] += jnp.dot(f_topk.astype(wt_ref.dtype), wt_ref[...],
                              preferred_element_type=jnp.float32)


def _decode_kernel_anyout(tau_ref, f_ref, wt_ref, b_dec_ref, recon_ref,
                          ftopk_ref, acc_ref):
    # Same as above but with an f32 scratch accumulator (non-f32 outputs).
    kk = pl.program_id(1)

    @pl.when(kk == 0)
    def _():
        acc_ref[...] = jnp.broadcast_to(b_dec_ref[...], acc_ref.shape)

    tau = tau_ref[0]
    f = f_ref[...].astype(jnp.float32)
    f_topk = jnp.where(f >= tau, f, 0.0)
    ftopk_ref[...] = f_topk.astype(ftopk_ref.dtype)
    acc_ref[...] += jnp.dot(f_topk.astype(wt_ref.dtype), wt_ref[...],
                            preferred_element_type=jnp.float32)

    @pl.when(kk == pl.num_programs(1) - 1)
    def _():
        recon_ref[...] = acc_ref[...].astype(recon_ref.dtype)


# ----------------------------- wrappers ------------------------------------ #

def encode_relu(x, W, b_enc, *, bm, tn, tkin, out_dtype):
    Bp, d_in_p = x.shape
    d_hidden_p = W.shape[1]
    gm, gn, gk = Bp // bm, d_hidden_p // tn, d_in_p // tkin

    tile_bytes = (bm * tkin * x.dtype.itemsize
                  + tkin * tn * W.dtype.itemsize
                  + tn * 4
                  + bm * tn * jnp.dtype(out_dtype).itemsize
                  + bm * tn * 4            # f32 accumulator scratch
                  + 8 * 128 * 4)
    flops = 2 * Bp * d_in_p * d_hidden_p
    bytes_accessed = (gn * Bp * d_in_p * x.dtype.itemsize
                      + gm * d_in_p * d_hidden_p * W.dtype.itemsize
                      + Bp * d_hidden_p * jnp.dtype(out_dtype).itemsize)

    return pl.pallas_call(
        _encode_kernel,
        out_shape=(
            jax.ShapeDtypeStruct((Bp, d_hidden_p), out_dtype),
            jax.ShapeDtypeStruct((8 * gm, 128 * gn), jnp.float32),
        ),
        grid=(gm, gn, gk),
        in_specs=[
            pl.BlockSpec((bm, tkin), lambda i, j, kd: (i, kd)),
            pl.BlockSpec((tkin, tn), lambda i, j, kd: (kd, j)),
            pl.BlockSpec((1, tn), lambda i, j, kd: (0, j)),
        ],
        out_specs=(
            pl.BlockSpec((bm, tn), lambda i, j, kd: (i, j)),
            pl.BlockSpec((8, 128), lambda i, j, kd: (i, j)),
        ),
        scratch_shapes=[pltpu.VMEM((bm, tn), jnp.float32)],
        compiler_params=pltpu.CompilerParams(
            dimension_semantics=("parallel", "parallel", "arbitrary"),
            vmem_limit_bytes=_vmem_limit_bytes(tile_bytes)),
        cost_estimate=pl.CostEstimate(flops=flops, transcendentals=0,
                                      bytes_accessed=bytes_accessed),
    )(x, W, b_enc)


def _count_ge(f, nrows, thr, *, bm, tn, vmem_limit):
    Bp, d_hidden_p = f.shape
    T = thr.shape[0]
    gm, gn = Bp // bm, d_hidden_p // tn
    return pl.pallas_call(
        _count_ge_kernel,
        out_shape=jax.ShapeDtypeStruct((1, T), jnp.int32),
        grid=(gm, gn),
        in_specs=[
            pl.BlockSpec(memory_space=pltpu.MemorySpace.SMEM),   # nrows (1,)
            pl.BlockSpec(memory_space=pltpu.MemorySpace.SMEM),   # thr (T,)
            pl.BlockSpec((bm, tn), lambda i, j: (i, j)),
        ],
        out_specs=pl.BlockSpec((1, T), lambda i, j: (0, 0)),
        compiler_params=pltpu.CompilerParams(
            dimension_semantics=("arbitrary", "arbitrary"),
            vmem_limit_bytes=vmem_limit),
    )(nrows, thr, f)


def _find_tau(f, nvalid_rows, numel, gmax, *, bm, tn, T=64, max_rounds=16):
    """Geometric threshold search: returns tau with count(f >= tau) == numel
    in the generic (no boundary tie) case; under exact ties returns the tied
    value (keeps all ties).  Each round is one pass of the count kernel over
    f at T thresholds; early exit once the count matches.
    TODO(synk): fuse round 0 (coarse histogram) into the encode kernel and
    replace the per-threshold reductions with a bucketize+histogram pass."""
    vmem_limit = _vmem_limit_bytes(bm * tn * f.dtype.itemsize + 4 * T)
    nrows = jnp.asarray([nvalid_rows], jnp.int32)
    numel32 = jnp.int32(numel)
    total = jnp.int32(f.shape[0] * f.shape[1])

    def cond(state):
        lo, hi, cnt, it = state
        return jnp.logical_and(cnt != numel32,
                               jnp.logical_and(it < max_rounds, hi > lo))

    def body(state):
        lo, hi, cnt, it = state
        w = (hi - lo) / T
        thr = (lo + w * jnp.arange(T, dtype=jnp.float32)).astype(jnp.float32)
        counts = _count_ge(f, nrows, thr, bm=bm, tn=tn,
                           vmem_limit=vmem_limit)[0]          # (T,) int32
        ok = counts >= numel32          # prefix of Trues (counts non-increasing)
        j = jnp.maximum(jnp.sum(ok.astype(jnp.int32)) - 1, 0)
        new_lo = thr[j]
        new_cnt = counts[j]
        new_hi = jnp.where(j == T - 1, hi, thr[jnp.minimum(j + 1, T - 1)])
        return (new_lo, new_hi, new_cnt, it + jnp.int32(1))

    hi0 = gmax.astype(jnp.float32) * jnp.float32(1.0 + 1e-6) + jnp.float32(1e-30)
    state0 = (jnp.float32(0.0), hi0, total, jnp.int32(0))
    lo, _, _, _ = lax.while_loop(cond, body, state0)
    return lo


def decode_with_mask(f, tau, Wt, b_dec, *, bm, tk, out_dtype):
    Bp, d_hidden_p = f.shape
    d_in_p = Wt.shape[1]
    gm, gk = Bp // bm, d_hidden_p // tk
    f32_out = jnp.dtype(out_dtype) == jnp.dtype(jnp.float32)

    kernel = _decode_kernel_f32out if f32_out else _decode_kernel_anyout
    scratch = [] if f32_out else [pltpu.VMEM((bm, d_in_p), jnp.float32)]

    tile_bytes = (bm * tk * f.dtype.itemsize
                  + tk * d_in_p * Wt.dtype.itemsize
                  + d_in_p * 4
                  + bm * d_in_p * jnp.dtype(out_dtype).itemsize
                  + bm * tk * f.dtype.itemsize
                  + (0 if f32_out else bm * d_in_p * 4))
    flops = 2 * Bp * d_hidden_p * d_in_p
    bytes_accessed = (2 * Bp * d_hidden_p * f.dtype.itemsize
                      + gm * d_hidden_p * d_in_p * Wt.dtype.itemsize
                      + Bp * d_in_p * jnp.dtype(out_dtype).itemsize)

    recon, f_topk = pl.pallas_call(
        kernel,
        out_shape=(
            jax.ShapeDtypeStruct((Bp, d_in_p), out_dtype),
            jax.ShapeDtypeStruct((Bp, d_hidden_p), f.dtype),   # aliased with f
        ),
        grid=(gm, gk),
        in_specs=[
            pl.BlockSpec(memory_space=pltpu.MemorySpace.SMEM),   # tau (1,)
            pl.BlockSpec((bm, tk), lambda i, kk: (i, kk)),       # f tile
            pl.BlockSpec((tk, d_in_p), lambda i, kk: (kk, 0)),   # W.T tile
            pl.BlockSpec((1, d_in_p), lambda i, kk: (0, 0)),     # b_dec
        ],
        out_specs=(
            pl.BlockSpec((bm, d_in_p), lambda i, kk: (i, 0)),    # recon (resident)
            pl.BlockSpec((bm, tk), lambda i, kk: (i, kk)),       # f_topk
        ),
        scratch_shapes=scratch,
        input_output_aliases={1: 1},      # reuse f's HBM buffer for f_topk
        compiler_params=pltpu.CompilerParams(
            dimension_semantics=("parallel", "arbitrary"),
            vmem_limit_bytes=_vmem_limit_bytes(tile_bytes)),
        cost_estimate=pl.CostEstimate(flops=flops, transcendentals=0,
                                      bytes_accessed=bytes_accessed),
    )(tau, f, Wt, b_dec)
    return recon, f_topk


def batch_topk_tied_sae_forward(x, params, k, *,
                                bm=None, tn=None, tk=None, tk_in=None):
    """Forward pass of BatchTopKTiedSAE.  `params` comes from prepare_params
    (weights padded / cast / transposed once).  Returns (recon, f_topk);
    recon is in x.dtype, f_topk in the compute dtype."""
    B, d_in = x.shape
    assert d_in == params.d_in
    d_in_p, d_hidden_p = params.W.shape
    out_dtype = x.dtype
    cdt = params.W.dtype

    dbm, dtn, dtk, dtkin = _default_tiles()
    bm = dbm if bm is None else bm
    tn = dtn if tn is None else tn
    tk = dtk if tk is None else tk
    tk_in = dtkin if tk_in is None else tk_in

    # ---- batch tiling (sublane aligned; >=2 blocks on dual-TC parts) -------
    B8 = _round_up(B, 8)
    bm_eff = min(_round_up(bm, 8), B8)
    if _is_small_vmem() and B8 >= 16 and B8 <= bm_eff:
        bm_eff = _round_up((B8 + 1) // 2, 8)   # keep both v7x TensorCores busy
    Bp = _round_up(B, bm_eff)

    tn_eff = _pick_tile(d_hidden_p, tn)
    tk_eff = _pick_tile(d_hidden_p, tk)
    tkin_eff = _pick_tile(d_in_p, tk_in)

    # Only the activations are padded / cast per call (weights are prepared).
    x_p = jnp.zeros((Bp, d_in_p), cdt).at[:B, :d_in].set(x.astype(cdt))
    f_dtype = jnp.float32 if cdt == jnp.dtype(jnp.float32) else cdt

    # ---- encode: f = relu(x @ W + b_enc), with per-tile maxima -------------
    f, tilemax = encode_relu(x_p, params.W, params.b_enc,
                             bm=bm_eff, tn=tn_eff, tkin=tkin_eff,
                             out_dtype=f_dtype)

    # ---- global (batch) top-k threshold via count/bisection search ---------
    numel = k * B
    gmax = jnp.max(tilemax)
    tau = _find_tau(f, B, numel, gmax, bm=bm_eff, tn=tn_eff)
    tau = jnp.reshape(tau, (1,)).astype(jnp.float32)

    # ---- decode (mask fused with W.T matmul, K-reduction over d_hidden) ----
    recon_p, ftopk_p = decode_with_mask(f, tau, params.Wt, params.b_dec,
                                        bm=bm_eff, tk=tk_eff,
                                        out_dtype=out_dtype)
    return recon_p[:B, :d_in], ftopk_p[:B, :params.d_hidden]


# ----------------------------- reference ----------------------------------- #

def reference_forward(x, W, b_enc, b_dec, k):
    f = jnp.maximum(x @ W + b_enc, 0.0)
    B = x.shape[0]
    numel = k * B
    flat = f.reshape(-1)
    vals, idx = lax.top_k(flat, numel)
    f_topk = jnp.zeros_like(flat).at[idx].set(vals).reshape(f.shape)
    recon = f_topk @ W.T + b_dec
    return recon, f_topk


# ------------------------------- main --------------------------------------- #

if __name__ == "__main__":
    key = jax.random.PRNGKey(0)
    k_w, k_x1, k_x2 = jax.random.split(key, 3)

    d_in, d_hidden, k = 64, 384, 4
    B = 24
    dtype = jnp.float32

    # Deterministic parameter init matching the module's __init__:
    # W = 0.1 * randn(d_in, d_hidden) / column_l2_norm, zero biases.
    W = jax.random.normal(k_w, (d_in, d_hidden), dtype=dtype)
    W = 0.1 * W / jnp.linalg.norm(W, axis=0, keepdims=True)
    b_enc = jnp.zeros((d_hidden,), dtype=dtype)
    b_dec = jnp.zeros((d_in,), dtype=dtype)
    x = jax.random.normal(k_x1, (B, d_in), dtype=dtype)

    # Weight preprocessing hoisted out of the forward: prepared ONCE per dtype.
    params_f32 = prepare_params(W, b_enc, b_dec, compute_dtype=jnp.float32)
    params_bf16 = prepare_params(W, b_enc, b_dec)   # default bf16 compute

    # --- run 1: default (generation-aware) tiling, exact f32 path -----------
    recon, f_topk = batch_topk_tied_sae_forward(x, params_f32, k)
    recon, f_topk = jax.block_until_ready((recon, f_topk))
    recon_ref, f_topk_ref = reference_forward(x, W, b_enc, b_dec, k)
    assert recon.shape == (B, d_in) and f_topk.shape == (B, d_hidden)
    assert jnp.allclose(f_topk, f_topk_ref, atol=1e-5, rtol=1e-5)
    assert jnp.allclose(recon, recon_ref, atol=1e-5, rtol=1e-5)

    # --- run 2: small tiles + ragged batch: exercises zero-padding, a
    #            multi-step batch grid and the hidden-K reduction pipeline ---
    B2, k2 = 20, 3
    x2 = jax.random.normal(k_x2, (B2, d_in), dtype=dtype)
    recon2, f_topk2 = batch_topk_tied_sae_forward(
        x2, params_f32, k2, bm=8, tn=128, tk=128, tk_in=128)
    recon2, f_topk2 = jax.block_until_ready((recon2, f_topk2))
    recon2_ref, f_topk2_ref = reference_forward(x2, W, b_enc, b_dec, k2)
    assert recon2.shape == (B2, d_in) and f_topk2.shape == (B2, d_hidden)
    assert jnp.allclose(f_topk2, f_topk2_ref, atol=1e-5, rtol=1e-5)
    assert jnp.allclose(recon2, recon2_ref, atol=1e-5, rtol=1e-5)

    # --- run 3: default bf16 MXU path (throughput path), f32 output ---------
    recon3, f_topk3 = batch_topk_tied_sae_forward(x, params_bf16, k)
    recon3, f_topk3 = jax.block_until_ready((recon3, f_topk3))
    assert recon3.shape == (B, d_in) and f_topk3.shape == (B, d_hidden)
    assert bool(jnp.isfinite(recon3).all())
    assert bool(jnp.isfinite(f_topk3.astype(jnp.float32)).all())
    assert float(jnp.max(jnp.abs(recon3 - recon_ref))) < 0.25

    # --- run 4: bf16 activations + bf16 outputs (exercises the scratch
    #            decode accumulator variant) --------------------------------
    x_bf = x.astype(jnp.bfloat16)
    recon4, f_topk4 = batch_topk_tied_sae_forward(x_bf, params_bf16, k)
    recon4, f_topk4 = jax.block_until_ready((recon4, f_topk4))
    assert recon4.shape == (B, d_in) and f_topk4.shape == (B, d_hidden)
    assert bool(jnp.isfinite(recon4.astype(jnp.float32)).all())
    assert float(jnp.max(jnp.abs(recon4.astype(jnp.float32) - recon_ref))) < 0.25

    print("KERNEL_OK")
</pallas_src>

<mosaic_0001>
module attributes {stable_mosaic.version = 11 : i64} {
  func.func @_encode_kernel(%arg0: i32, %arg1: i32, %arg2: i32, %arg3: memref<16x128xf32, #tpu.memory_space<vmem>>, %arg4: memref<128x384xf32, #tpu.memory_space<vmem>>, %arg5: memref<1x384xf32, #tpu.memory_space<vmem>>, %arg6: memref<16x384xf32, #tpu.memory_space<vmem>>, %arg7: memref<8x128xf32, #tpu.memory_space<vmem>>, %arg8: memref<16x384xf32, #tpu.memory_space<vmem>>) attributes {dimension_semantics = [#tpu.dimension_semantics<parallel>, #tpu.dimension_semantics<parallel>, #tpu.dimension_semantics<arbitrary>], iteration_bounds = array<i64: 2, 1, 1>, scalar_prefetch = 0 : i64, scratch_operands = 1 : i64, tpu.core_type = #tpu.core_type<tc>, window_params = [{transform_indices = @transform_0, window_bounds = array<i64: 16, 128>}, {transform_indices = @transform_1, window_bounds = array<i64: 128, 384>}, {transform_indices = @transform_2, window_bounds = array<i64: 1, 384>}, {transform_indices = @transform_3, window_bounds = array<i64: 16, 384>}, {transform_indices = @transform_4, window_bounds = array<i64: 8, 128>}]} {
    %c0_i32 = arith.constant 0 : i32
    %0 = arith.cmpi eq, %arg2, %c0_i32 : i32
    %1 = arith.extui %0 : i1 to i32
    %c0_i32_0 = arith.constant 0 : i32
    %2 = arith.cmpi ne, %1, %c0_i32_0 : i32
    scf.if %2 {
      %cst_10 = arith.constant 0.000000e+00 : f32
      %12 = vector.broadcast %cst_10 : f32 to vector<16x384xf32>
      %c0_11 = arith.constant 0 : index
      %c0_12 = arith.constant 0 : index
      %13 = vector.load %arg8[%c0_11, %c0_12] : memref<16x384xf32, #tpu.memory_space<vmem>>, vector<16x384xf32>
      tpu.vector_store %arg8[%c0_11, %c0_12], %12 {strides = array<i32>} : memref<16x384xf32, #tpu.memory_space<vmem>>, vector<16x384xf32>,
    } else {
    }
    %c0 = arith.constant 0 : index
    %c0_1 = arith.constant 0 : index
    %3 = vector.load %arg8[%c0, %c0_1] : memref<16x384xf32, #tpu.memory_space<vmem>>, vector<16x384xf32>
    %c0_2 = arith.constant 0 : index
    %c0_3 = arith.constant 0 : index
    %4 = vector.load %arg3[%c0_2, %c0_3] : memref<16x128xf32, #tpu.memory_space<vmem>>, vector<16x128xf32>
    %c0_4 = arith.constant 0 : index
    %c0_5 = arith.constant 0 : index
    %5 = vector.load %arg4[%c0_4, %c0_5] : memref<128x384xf32, #tpu.memory_space<vmem>>, vector<128x384xf32>
    %cst = arith.constant dense<0.000000e+00> : vector<16x384xf32>
    %6 = tpu.matmul %4, %5, %cst {dimension_numbers = #tpu.dot_dimension_numbers<[1], [0], [0], [1], [0, 0, 1, 1], [], []>} : vector<16x128xf32>, vector<128x384xf32>, vector<16x384xf32> -> vector<16x384xf32>
    %7 = arith.addf %3, %6 : vector<16x384xf32>
    %c0_6 = arith.constant 0 : index
    %c0_7 = arith.constant 0 : index
    %8 = vector.load %arg8[%c0_6, %c0_7] : memref<16x384xf32, #tpu.memory_space<vmem>>, vector<16x384xf32>
    tpu.vector_store %arg8[%c0_6, %c0_7], %7 {strides = array<i32>} : memref<16x384xf32, #tpu.memory_space<vmem>>, vector<16x384xf32>,
    %c0_i32_8 = arith.constant 0 : i32
    %9 = arith.cmpi eq, %arg2, %c0_i32_8 : i32
    %10 = arith.extui %9 : i1 to i32
    %c0_i32_9 = arith.constant 0 : i32
    %11 = arith.cmpi ne, %10, %c0_i32_9 : i32
    scf.if %11 {
      %c0_10 = arith.constant 0 : index
      %c0_11 = arith.constant 0 : index
      %12 = vector.load %arg8[%c0_10, %c0_11] : memref<16x384xf32, #tpu.memory_space<vmem>>, vector<16x384xf32>
      %c0_12 = arith.constant 0 : index
      %c0_13 = arith.constant 0 : index
      %13 = vector.load %arg5[%c0_12, %c0_13] : memref<1x384xf32, #tpu.memory_space<vmem>>, vector<1x384xf32>
      %14 = vector.broadcast %13 : vector<1x384xf32> to vector<16x384xf32>
      %15 = arith.addf %12, %14 : vector<16x384xf32>
      %cst_14 = arith.constant 0.000000e+00 : f32
      %16 = vector.broadcast %cst_14 : f32 to vector<16x384xf32>
      %17 = arith.maximumf %15, %16 : vector<16x384xf32>
      %c0_15 = arith.constant 0 : index
      %c0_16 = arith.constant 0 : index
      %18 = vector.load %arg6[%c0_15, %c0_16] : memref<16x384xf32, #tpu.memory_space<vmem>>, vector<16x384xf32>
      tpu.vector_store %arg6[%c0_15, %c0_16], %17 {strides = array<i32>} : memref<16x384xf32, #tpu.memory_space<vmem>>, vector<16x384xf32>,
      %cst_17 = arith.constant dense<0xFF800000> : vector<16xf32>
      %19 = vector.multi_reduction <maximumf>, %17, %cst_17 [1] : vector<16x384xf32> to vector<16xf32>
      %20 = vector.shape_cast %19 : vector<16xf32> to vector<16x1xf32>
      %cst_18 = arith.constant dense<0xFF800000> : vector<1xf32>
      %21 = vector.multi_reduction <maximumf>, %20, %cst_18 [0] : vector<16x1xf32> to vector<1xf32>
      %22 = vector.shape_cast %21 : vector<1xf32> to vector<1x1xf32>
      %23 = vector.shape_cast %22 : vector<1x1xf32> to vector<1x1xf32>
      %24 = vector.broadcast %23 : vector<1x1xf32> to vector<8x128xf32>
      %c0_19 = arith.constant 0 : index
      %c0_20 = arith.constant 0 : index
      %25 = vector.load %arg7[%c0_19, %c0_20] : memref<8x128xf32, #tpu.memory_space<vmem>>, vector<8x128xf32>
      tpu.vector_store %arg7[%c0_19, %c0_20], %24 {strides = array<i32>} : memref<8x128xf32, #tpu.memory_space<vmem>>, vector<8x128xf32>,
    } else {
    }
    return
  }
  func.func @transform_0(%arg0: i32, %arg1: i32, %arg2: i32) -> (i32, i32) {
    %c0_i32 = arith.constant 0 : i32
    return %arg0, %arg2 : i32, i32
  }
  func.func @transform_1(%arg0: i32, %arg1: i32, %arg2: i32) -> (i32, i32) {
    %c0_i32 = arith.constant 0 : i32
    return %arg2, %arg1 : i32, i32
  }
  func.func @transform_2(%arg0: i32, %arg1: i32, %arg2: i32) -> (i32, i32) {
    %c0_i32 = arith.constant 0 : i32
    %c0_i32_0 = arith.constant 0 : i32
    return %c0_i32, %arg1 : i32, i32
  }
  func.func @transform_3(%arg0: i32, %arg1: i32, %arg2: i32) -> (i32, i32) {
    %c0_i32 = arith.constant 0 : i32
    return %arg0, %arg1 : i32, i32
  }
  func.func @transform_4(%arg0: i32, %arg1: i32, %arg2: i32) -> (i32, i32) {
    %c0_i32 = arith.constant 0 : i32
    return %arg0, %arg1 : i32, i32
  }
}

</mosaic_0001>

<bundles_post_ra>
// kernel: tpu_custom_call.1
= control target key start
LH: loop header
LB: loop body
LE: loop exit
PB: predicated region body
PF: predicated region fallthrough
CT: control target
= control target key end

     0   :  { %10 = vsyncpa [#allocation4], 0  ;;  %s1479_s0 = inlined_call_operand.hbm [shape: f32[32,128], index: 0, kind: input, shape index: {}]   ;;  %s1480_s1 = inlined_call_operand.hbm [shape: f32[128,384], index: 1, kind: input, shape index: {}]   ;;  %s1481_s2 = inlined_call_operand.vmem [shape: f32[1,384], index: 2, kind: input, shape index: {}]   ;;  %s1482_s3 = inlined_call_operand.hbm [shape: f32[32,384], index: 3, kind: output, shape index: {0}]   ;;  %s1483_s4 = inlined_call_operand.hbm [shape: f32[16,128], index: 4, kind: output, shape index: {1}]  }
   0x1   :  { %12 = vsyncpa [#allocation4 + $0x1], 0 }
   0x2   :  { %13 = vsyncpa [#allocation7], 0 }
   0x3   :  { %14 = vsyncpa [#allocation5], 0 }
   0x4   :  { %16 = vsyncpa [#allocation5 + $0x1], 0 }
   0x5   :  { %17 = vsyncpa [#allocation10], 0 }
   0x6   :  { %19 = vsyncpa [#allocation10 + $0x1], 0  ;;  %s1219_s15 = smov 0   ;;  %s1221_s16 = smov 0  }
   0x7   :  { %s1223_s17 = smov 0   ;;  %s1225_s18 = smov 0  }
   0x8   :  { %s1227_s19 = smov 0   ;;  %s1229_s20 = smov 0  }
   0x9 LB: > { %s780_s21 = sadd.s32 4294967295, %s1181_s20   ;;  %s781_s22 = sadd.s32 4294967294, %s1181_s20   ;;  %s1181_s20 = sphi %s1229_s20, %s25_s20   ;;  %s1177_s19 = sphi %s1227_s19, %s1507_s19   ;;  %s1173_s18 = sphi %s1225_s18, %s1506_s18   ;;  %s1169_s17 = sphi %s1223_s17, %s1505_s17   ;;  %s1165_s16 = sphi %s1221_s16, %s1504_s16   ;;  %s1161_s15 = sphi %s1219_s15, %s1503_s15  }
   0xa   : > { %p66_p0 = scmp.ne.s32.totalorder %s1165_s16, %s1161_s15  ;;  %p1253_p1 = scmp.eq.s32.totalorder %s780_s21, 0 }
   0xb   : > { %p1257_p2 = scmp.eq.s32.totalorder %s780_s21, 1  ;;  %p152_p3 = scmp.eq.s32.totalorder %s781_s22, 1 }
   0xc   : > { %s1488_s23 = scalar_select %p1253_p1, 1, 0 }
   0xd   : > { %s1489_s24 = scalar_select %p1257_p2, 1, 0 }
   0xe   : > { %p1263_p4 = por %p1253_p1, %p66_p0  ;;  %p782_p5 = scmp.ge.s32.totalorder %s1181_s20, 1 }
   0xf   : > { %p1268_p6 = por %p152_p3, %p66_p0  ;;  %p187_p7 = scmp.lt.s32.totalorder %s1181_s20, 3 }
  0x10   : > { %s1490_s25 = scalar_select %p1263_p4, 1, 0 }
  0x11   : > { %s1491_s26 = scalar_select %p1268_p6, 1, 0 }
  0x12   : > { %p1273_p8 = pnand %p782_p5, %p187_p7  ;;  %s1183_s28 = smov [#allocation6]  }
  0x13   : > { %s205_s29 = sshll.u32 %s1183_s28, 4  ;;  %s44_s5 = sadd.s32 1, %s1177_s19  ;;  %s206_s29 = int_to_ptr.vmem [resolvable:$true] %s205_s29 }
  0x14   : > { %s1492_s27 = scalar_select %p1273_p8, 1, 0 }
  0x15   : > { %p930_p9 = pneg %p1273_p8  ;;  %s1005_s8 = scalar_lea.hbm %s1480_s1, 6144 }
  0x16   : > { %p1006_p12 = scmp.ne.s32.totalorder %s1480_s1, %s1005_s8  ;;  %p1012_p5 = scmp.lt.u32.totalorder %s1005_s8, %s1480_s1 }
  0x17   : > { %p1282_p11 = pnand %p930_p9, %p1253_p1 }
  0x19   : > { %p1007_p13 = pneg %p1282_p11 }
  0x1b   : > { %p1008_p0 = pnand %p1007_p13, %p1006_p12 }
  0x1d   : > { %p1009_p3 = pneg %p1008_p0 }
  0x1f   : > { %p1014_p7 = pnand %p1012_p5, %p1009_p3 }
  0x21   : > { %1017 = shalt.err (!%p1014_p7)
}
  0x22   : > { %s1018_s13 = scalar_lea.vmem %s206_s29, 6144  ;;  %p1026_p1 = scmp.lt.s32.totalorder %s206_s29, %s206_s29 }
  0x23   : > { %p1019_p9 = scmp.ne.s32.totalorder %s206_s29, %s1018_s13  ;;  %p1027_p4 = scmp.lt.s32.totalorder %s1018_s13, %s1018_s13 }
  0x25   : > { %p1021_p10 = pnand %p1019_p9, %p1007_p13  ;;  %p1028_p8 = por %p1027_p4, %p1026_p1 }
  0x27   : > { %p1022_p6 = pneg %p1021_p10 }
  0x29   : > { %p1029_p2 = pnand %p1028_p8, %p1022_p6 }
  0x2b   : > { %1032 = shalt.err (!%p1029_p2)
}
  0x2c   : > { %s1184_s14 = smov 384   ;;  %s1185_s21 = smov 24  }
  0x2d   : > { %933 = dma.hbm_to_vmem [thread:$0]  (!%p1282_p11), %s1480_s1, 6144, %s206_s29, [#allocation7], %s1184_s14, %s1184_s14, %s1185_s21  }
  0x2e   : > { %p46_p1 = scmp.ge.s32.totalorder %s44_s5, 2  ;;  %s53_s6 = sadd.s32 1, %s1169_s17 }
  0x2f   : > { %p60_p2 = scmp.ne.s32.totalorder %s1169_s17, %s1165_s16  ;;  %p61_p4 = scmp.eq.s32.totalorder %s1181_s20, 0 }
  0x30   : > { %s1509_s5 = smov (%p46_p1, %s44_s5), 0  ;;  %p1495_p8 = scmp.ne.s32.totalorder %s1489_s24, 0 }
  0x31   : > { %p1309_p6 = por %p61_p4, %p60_p2  ;;  %s48_s30 = ssub.s32 %s1177_s19, %s1509_s5 }
  0x32   : > { %p1315_p10 = por %p1495_p8, %p60_p2  ;;  %p946_p12 = scmp.lt.s32.totalorder %s1181_s20, 2 }
  0x33   : > { %p51_p11 = scmp.eq.s32.totalorder %s48_s30, 0  ;;  %s227_s29 = sand.u32 1, %s1169_s17  }
  0x34   : > { %s786_s9 = sshll.u32 %s227_s29, 4  ;;  %s800_s11 = sshll.u32 %s1177_s19, 8 }
  0x35   : > { %s1324_s10 = scalar_select %p51_p11, %s1169_s17, %s53_s6  }
  0x36   : > { %s1330_s14 = scalar_lea.hbm %s1479_s0, %s800_s11  ;;  %s231_s24 = scalar_lea.vmem [#allocation3], %s786_s9 }
  0x37   : > { %s239_s21 = sshll.u32 %s231_s24, 4  ;;  %p1336_p13 = pnand %p946_p12, %p1309_p6  ;;  %s1332_s21 = int_to_ptr.vmem [resolvable:$true] %s239_s21 }
  0x38   : > { %s1340_s28 = scalar_lea.sflag [#allocation4], %s227_s29  ;;  %s1033_s6 = scalar_lea.hbm %s1330_s14, 256 }
  0x39   : > { %p1034_p0 = scmp.ne.s32.totalorder %s1330_s14, %s1033_s6  ;;  %p1035_p3 = pneg %p1336_p13 }
  0x3a   : > { %s1038_s7 = scalar_lea.hbm %s1479_s0, 512  ;;  %p1039_p9 = scmp.lt.u32.totalorder %s1330_s14, %s1479_s0 }
  0x3b   : > { %p1036_p5 = pnand %p1035_p3, %p1034_p0  ;;  %p1040_p1 = scmp.lt.u32.totalorder %s1038_s7, %s1033_s6 }
  0x3c   : > { %p1042_p4 = scmp.lt.u32.totalorder %s1033_s6, %s1330_s14 }
  0x3d   : > { %p1037_p7 = pneg %p1036_p5  ;;  %p1041_p2 = por %p1040_p1, %p1039_p9 }
  0x3f   : > { %p1043_p6 = por %p1042_p4, %p1041_p2 }
  0x41   : > { %p1044_p8 = pnand %p1043_p6, %p1037_p7 }
  0x43   : > { %1047 = shalt.err (!%p1044_p8)
}
  0x44   : > { %s1048_s29 = scalar_lea.vmem %s1332_s21, 256  ;;  %s1186_s13 = smov [#allocation3]  }
  0x45   : > { %p1049_p12 = scmp.ne.s32.totalorder %s1332_s21, %s1048_s29  ;;  %s1053_s24 = sshll.u32 %s1186_s13, 4  ;;  %s1054_s24 = int_to_ptr.vmem [resolvable:$false] %s1053_s24 }
  0x46   : > { %s1055_s30 = scalar_lea.vmem %s1054_s24, 512  ;;  %p1056_p5 = scmp.lt.s32.totalorder %s1332_s21, %s1054_s24 }
  0x47   : > { %p1051_p11 = pnand %p1049_p12, %p1035_p3  ;;  %p1057_p9 = scmp.lt.s32.totalorder %s1055_s30, %s1048_s29 }
  0x49   : > { %p1052_p0 = pneg %p1051_p11  ;;  %p1058_p1 = por %p1057_p9, %p1056_p5 }
  0x4b   : > { %p1059_p2 = pnand %p1058_p1, %p1052_p0 }
  0x4d   : > { %1062 = shalt.err (!%p1059_p2)
}
  0x4e   : > { %s1187_s6 = smov 128   ;;  %s1188_s9 = smov 8  }
  0x4f   : > { %937 = dma.hbm_to_vmem [thread:$0]  (!%p1336_p13), %s1330_s14, 256, %s1332_s21, %s1340_s28, %s1187_s6, %s1187_s6, %s1188_s9  }
  0x50   : > { %p1498_p3 = scmp.ne.s32.totalorder %s1492_s27, 0 }
  0x51   : > { %s1371_s7 = sand.u32 (!%p1498_p3), 1, %s1165_s16   ;;  %p1499_p7 = scmp.ne.s32.totalorder (!%p1498_p3), %s1490_s25, 0 }
  0x52   : > { %251 = sbr.rel (%p1498_p3) target bundleno = 524 (0x20c), region = 32  ;;  %s790_s11 = sshll.u32 (!%p1498_p3), %s1371_s7, 4 }
  0x53   : > { %s254_s12 = scalar_lea.sflag (!%p1498_p3), [#allocation4], %s1371_s7  ;;  %s1375_s29 = scalar_lea.vmem (!%p1498_p3), [#allocation3], %s790_s11 }
  0x59   : > { %1144 = dma.done.wait (%p1499_p7), %s254_s12, 256  }
  0x5a   : > { %1146 = vsyncadd (%p1499_p7), %s254_s12, 4294967040  ;;  %p1500_p13 = scmp.ne.s32.totalorder %s1488_s23, 0 }
  0x5c   : > { %1148 = dma.done.wait (%p1500_p13), [#allocation7], 6144  }
  0x5d   : > { %1150 = vsyncadd (%p1500_p13), [#allocation7], 4294961152  ;;  %v1189_v0 = vmov 0.0   ;;  %v324_v1 = vld [vmem:[#allocation6 + $0x8] sm:$0xff]  ;;  %v327_v2 = vld [vmem:[#allocation6 + $0x20] sm:$0xff]  ;;  %s918_s27 = smul.u32 48, %s1371_s7 }
  0x5e   : > { %435 = vmatprep.mubr.f32.mxu0 %v1189_v0  ;;  %v325_v3 = vld [vmem:[#allocation6 + $0x10] sm:$0xff]  ;;  %v854_v4 = vpack.c.bf16 %v327_v2, %v324_v1  ;;  %v328_v5 = vld [vmem:[#allocation6 + $0x28] sm:$0xff]  ;;  %v323_v6 = vld [vmem:[#allocation6] sm:$0xff]  ;;  %s919_s22 = smul.u32 768, %s1173_s18  ;;  %s596_s30 = scalar_lea.sflag [#allocation5], %s1371_s7 }
  0x5f   : > { %v326_v7 = vld [vmem:[#allocation6 + $0x18] sm:$0xff]  ;;  %v886_v8 = vpack.c.bf16 %v328_v5, %v325_v3  ;;  %v333_v11 = vld [vmem:[#allocation6 + $0x50] sm:$0xff]  ;;  %v331_v12 = vld [vmem:[#allocation6 + $0x40] sm:$0xff]  ;;  %s287_s14 = scalar_lea.vmem [#allocation8], %s918_s27  ;;  %s1190_s9 = smov [#allocation8]  }
  0x60   : > { %v856_v9 = vpack.c.bf16 %v326_v7, %v323_v6  ;;  %v330_v10 = vld [vmem:[#allocation6 + $0x38] sm:$0xff]  ;;  %855 = vmatprep.subr.bf16.mxu0 %v854_v4  ;;  %v329_v15 = vld [vmem:[#allocation6 + $0x30] sm:$0xff]  ;;  %v332_v16 = vld [vmem:[#allocation6 + $0x48] sm:$0xff]  ;;  %s617_s21 = sshll.u32 %s287_s14, 4  ;;  %s1399_s24 = scalar_lea.hbm %s1482_s3, %s919_s22  ;;  %s1393_s21 = int_to_ptr.vmem [resolvable:$true] %s617_s21 }
  0x61   : > { %v858_v13 = vpack.c.bf16 %v333_v11, %v330_v10  ;;  %v334_v14 = vld [vmem:[#allocation6 + $0x58] sm:$0xff]  ;;  %887 = vmatprep.subr.bf16.mxu1 %v886_v8  ;;  %v860_v18 = vpack.c.bf16 %v332_v16, %v329_v15  ;;  %v336_v19 = vld [vmem:[#allocation6 + $0x68] sm:$0xff]  ;;  %v339_v20 = vld [vmem:[#allocation6 + $0x80] sm:$0xff]  ;;  %s1063_s6 = scalar_lea.vmem %s1393_s21, 768  ;;  %s1067_s11 = sshll.u32 %s1190_s9, 4  ;;  %s1068_s11 = int_to_ptr.vmem [resolvable:$false] %s1067_s11 }
  0x62   : > { %857 = vmatpush1.bf16.msra.mxu0 %v856_v9  ;;  %v890_v17 = vpack.c.bf16 %v334_v14, %v331_v12  ;;  %v337_v21 = vld [vmem:[#allocation6 + $0x70] sm:$0xff]  ;;  %889 = vmatpush3.bf16.msra.mxu1 %v886_v8  ;;  %v862_v22 = vpack.c.bf16 %v339_v20, %v336_v19  ;;  %v340_v23 = vld [vmem:[#allocation6 + $0x88] sm:$0xff]  ;;  %v335_v24 = vld [vmem:[#allocation6 + $0x60] sm:$0xff]  ;;  %v546_v12 = vlaneseq  ;;  %p1064_p4 = scmp.ne.s32.totalorder %s1393_s21, %s1063_s6  ;;  %s1069_s12 = scalar_lea.vmem %s1068_s11, 1536 }
  0x63   : > { %859 = vmatprep.subr.bf16.mxu0 %v858_v13  ;;  %v338_v25 = vld [vmem:[#allocation6 + $0x78] sm:$0xff]  ;;  %v894_v26 = vpack.c.bf16 %v340_v23, %v337_v21  ;;  %v345_v28 = vld [vmem:[#allocation6 + $0xb0] sm:$0xff]  ;;  %v343_v29 = vld [vmem:[#allocation6 + $0xa0] sm:$0xff]  ;;  %p1070_p12 = scmp.lt.s32.totalorder %s1393_s21, %s1068_s11  ;;  %p1071_p11 = scmp.lt.s32.totalorder %s1069_s12, %s1063_s6 }
  0x64   : > { %891 = vmatprep.subr.bf16.mxu1 %v890_v17  ;;  %v342_v27 = vld [vmem:[#allocation6 + $0x98] sm:$0xff]  ;;  %v864_v31 = vpack.c.bf16 %v338_v25, %v335_v24  ;;  %v341_v33 = vld [vmem:[#allocation6 + $0x90] sm:$0xff]  ;;  %v344_v34 = vld [vmem:[#allocation6 + $0xa8] sm:$0xff]  ;;  %v547_v13 = vshrl.u32 %v546_v12, 7  ;;  %p1065_p6 = pnand %p1064_p4, %p1315_p10 }
  0x65   : > { %v346_v30 = vld [vmem:[#allocation6 + $0xb8] sm:$0xff]  ;;  %v866_v32 = vpack.c.bf16 %v345_v28, %v342_v27  ;;  %v348_v36 = vld [vmem:[#allocation6 + $0xc8] sm:$0xff]  ;;  %v351_v37 = vld [vmem:[#allocation6 + $0xe0] sm:$0xff]  ;;  %v868_v40 = vpack.c.bf16 %v344_v34, %v341_v33  ;;  %p1072_p0 = por %p1071_p11, %p1070_p12 }
  0x66   : > { %861 = vmatpush1.bf16.msra.mxu0 %v860_v18  ;;  %893 = vmatpush3.bf16.msra.mxu1 %v890_v17  ;;  %v898_v35 = vpack.c.bf16 %v346_v30, %v343_v29  ;;  %v349_v38 = vld [vmem:[#allocation6 + $0xd0] sm:$0xff]  ;;  %v352_v39 = vld [vmem:[#allocation6 + $0xe8] sm:$0xff]  ;;  %v870_v41 = vpack.c.bf16 %v351_v37, %v348_v36  ;;  %v347_v42 = vld [vmem:[#allocation6 + $0xc0] sm:$0xff]  ;;  %v548_v14 = vsub.s32 0, %v547_v13  ;;  %v556_v16 = vsub.s32 2, %v547_v13  ;;  %p1066_p8 = pneg %p1065_p6 }
  0x67   : > { %863 = vmatprep.subr.bf16.mxu0 %v862_v22  ;;  %895 = vmatprep.subr.bf16.mxu1 %v894_v26  ;;  %v350_v43 = vld [vmem:[#allocation6 + $0xd8] sm:$0xff]  ;;  %v902_v44 = vpack.c.bf16 %v352_v39, %v349_v38  ;;  %v357_v46 = vld [vmem:[#allocation6 + $0x110] sm:$0xff]  ;;  %v355_v47 = vld [vmem:[#allocation6 + $0x100] sm:$0xff]  ;;  %v552_v17 = vsub.s32 1, %v547_v13 }
  0x68   : > { %v354_v45 = vld [vmem:[#allocation6 + $0xf8] sm:$0xff]  ;;  %v872_v49 = vpack.c.bf16 %v350_v43, %v347_v42  ;;  %v321_v50 = vld [vmem:[%s1375_s29] sm:$0xff]  ;;  %v356_v53 = vld [vmem:[#allocation6 + $0x108] sm:$0xff]  ;;  %p1073_p5 = pnand %p1072_p0, %p1066_p8 }
  0x69   : > { %v358_v48 = vld [vmem:[#allocation6 + $0x118] sm:$0xff]  ;;  %v874_v51 = vpack.c.bf16 %v357_v46, %v354_v45  ;;  %v353_v52 = vld [vmem:[#allocation6 + $0xf0] sm:$0xff]  ;;  %v360_v55 = vld [vmem:[#allocation6 + $0x128] sm:$0xff]  ;;  %851 = vmatprep.mubr.f32.mxu1 %v321_v50 }
  0x6a   : > { %865 = vmatpush1.bf16.msra.mxu0 %v864_v31  ;;  %897 = vmatpush3.bf16.msra.mxu1 %v894_v26  ;;  %v906_v54 = vpack.c.bf16 %v358_v48, %v355_v47  ;;  %v363_v56 = vld [vmem:[#allocation6 + $0x140] sm:$0xff]  ;;  %v361_v57 = vld [vmem:[#allocation6 + $0x130] sm:$0xff]  ;;  %v364_v58 = vld [vmem:[#allocation6 + $0x148] sm:$0xff]  ;;  %v876_v59 = vpack.c.bf16 %v356_v53, %v353_v52 }
  0x6b   : > { %867 = vmatprep.subr.bf16.mxu0 %v866_v32  ;;  %899 = vmatprep.subr.bf16.mxu1 %v898_v35  ;;  %v878_v60 = vpack.c.bf16 %v363_v56, %v360_v55  ;;  %v359_v61 = vld [vmem:[#allocation6 + $0x120] sm:$0xff]  ;;  %v362_v62 = vld [vmem:[#allocation6 + $0x138] sm:$0xff]  ;;  %v910_v63 = vpack.c.bf16 %v364_v58, %v361_v57  ;;  %v369_v2 = vld [vmem:[#allocation6 + $0x170] sm:$0xff] }
  0x6c   : > { %v366_v1 = vld [vmem:[#allocation6 + $0x158] sm:$0xff]  ;;  %v367_v3 = vld [vmem:[#allocation6 + $0x160] sm:$0xff]  ;;  %v880_v5 = vpack.c.bf16 %v362_v62, %v359_v61  ;;  %v365_v7 = vld [vmem:[#allocation6 + $0x150] sm:$0xff] }
  0x6d   : > { %v370_v4 = vld [vmem:[#allocation6 + $0x178] sm:$0xff]  ;;  %v882_v6 = vpack.c.bf16 %v369_v2, %v366_v1  ;;  %v368_v8 = vld [vmem:[#allocation6 + $0x168] sm:$0xff]  ;;  %v544_v15 = vld [vmem:[%s1481_s2] sm:$0x7] }
  0x6e   : > { %869 = vmatpush1.bf16.msra.mxu0 %v868_v40  ;;  %901 = vmatpush3.bf16.msra.mxu1 %v898_v35  ;;  %v914_v9 = vpack.c.bf16 %v370_v4, %v367_v3  ;;  %v884_v10 = vpack.c.bf16 %v368_v8, %v365_v7  ;;  %v322_v11 = vld [vmem:[%s1375_s29 + $0x8] sm:$0xff]  ;;  %v549_v18 = vrot.slane %v544_v15, %v548_v14 }
  0x6f   : > { %871 = vmatprep.subr.bf16.mxu0 %v870_v41  ;;  %903 = vmatprep.subr.bf16.mxu1 %v902_v44  ;;  %v557_v19 = vrot.slane %v544_v15, %v556_v16  ;;  %v553_v20 = vrot.slane %v544_v15, %v552_v17 }
  0x72   : > { %873 = vmatpush1.bf16.msra.mxu0 %v872_v49  ;;  %905 = vmatpush3.bf16.msra.mxu1 %v902_v44 }
  0x73   : > { %875 = vmatprep.subr.bf16.mxu0 %v874_v51  ;;  %907 = vmatprep.subr.bf16.mxu1 %v906_v54 }
  0x76   : > { %877 = vmatpush1.bf16.msra.mxu0 %v876_v59  ;;  %909 = vmatpush3.bf16.msra.mxu1 %v906_v54 }
  0x77   : > { %879 = vmatprep.subr.bf16.mxu0 %v878_v60  ;;  %911 = vmatprep.subr.bf16.mxu1 %v910_v63 }
  0x7a   : > { %881 = vmatpush1.bf16.msra.mxu0 %v880_v5  ;;  %913 = vmatpush3.bf16.msra.mxu1 %v910_v63 }
  0x7b   : > { %883 = vmatprep.subr.bf16.mxu0 %v882_v6  ;;  %915 = vmatprep.subr.bf16.mxu1 %v914_v9 }
  0x7e   : > { %885 = vmatpush1.bf16.msra.mxu0 %v884_v10  ;;  %917 = vmatpush3.bf16.msra.mxu1 %v914_v9 }
  0x81   : > { %436 = vmatmul.mubr.f32.vlgmr.msra.gmra.mrb[0].mxu0 %v321_v50  ;;  %852 = vmatmul.mubr.f32.vlgmr.msra.gmra.mrb[0].mxu1 %v322_v11 }
  0x82   : > { %441 = vmatprep.mubr.f32.mxu0 %v1189_v0 }
  0x85   : > { %442 = vmatmul.mubr.f32.gmra.mrb[2].mxu0 %v322_v11 }
 0x154   : > { %v437_v21 = vpop.f32.mrb[0].mxu0  ;;  %v853_v23 = vpop.f32.mrb[0].mxu1 }
 0x155   : > { %v561_v22 = vadd.f32 %v549_v18, %v437_v21  ;;  %v439_v24 = vpop.f32.mrb[1].mxu0  ;;  %v566_v25 = vadd.f32 %v853_v23, %v557_v19  ;;  %v514_v26 = vpop.f32.mrb[1].mxu1 }
 0x156   : > { %v562_v0 = vadd.f32 %v553_v20, %v439_v24  ;;  %v563_v28 = vadd.f32 %v557_v19, %v514_v26 }
 0x157   : > { %v567_v27 = vmax.f32 %v561_v22, 0.0  ;;  %v572_v29 = vmax.f32 %v566_v25, 0.0 }
 0x158   : > { %v568_v30 = vmax.f32 %v562_v0, 0.0  ;;  %v443_v31 = vpop.f32.mrb[2].mxu0  ;;  %v569_v32 = vmax.f32 %v563_v28, 0.0 }
 0x159   : > { %573 = vst [vmem:[%s287_s14] sm:$0xff] %v567_v27  ;;  %v564_v33 = vadd.f32 %v549_v18, %v443_v31  ;;  %v445_v34 = vpop.f32.mrb[3].mxu0  ;;  %578 = vst [vmem:[%s287_s14 + $0x28] sm:$0xff] %v572_v29 }
 0x15a   : > { %574 = vst [vmem:[%s287_s14 + $0x8] sm:$0xff] %v568_v30  ;;  %v565_v35 = vadd.f32 %v553_v20, %v445_v34  ;;  %575 = vst [vmem:[%s287_s14 + $0x10] sm:$0xff] %v569_v32  ;;  %v579_v37 = vmax.f32 %v567_v27, %v569_v32 }
 0x15b   : > { %v570_v36 = vmax.f32 %v564_v33, 0.0 }
 0x15c   : > { %v571_v38 = vmax.f32 %v565_v35, 0.0  ;;  %v580_v40 = vmax.f32 %v579_v37, %v568_v30 }
 0x15d   : > { %576 = vst [vmem:[%s287_s14 + $0x18] sm:$0xff] %v570_v36  ;;  %v583_v39 = vmax.f32 %v570_v36, %v572_v29 }
 0x15e   : > { %577 = vst [vmem:[%s287_s14 + $0x20] sm:$0xff] %v571_v38  ;;  %581 = vmax.xlane.f32.xlu0 %v580_v40 }
 0x15f   : > { %v584_v41 = vmax.f32 %v583_v39, %v571_v38 }
 0x162   : > { %585 = vmax.xlane.f32.xlu0 %v584_v41 }
 0x163   : > { %1076 = shalt.err (!%p1073_p5)
}
 0x164   : > { %s1077_s29 = scalar_lea.hbm %s1399_s24, 768  ;;  %s1081_s27 = scalar_lea.hbm %s1482_s3, 1536 }
 0x165   : > { %p1078_p9 = scmp.ne.s32.totalorder %s1399_s24, %s1077_s29  ;;  %p1082_p3 = scmp.lt.u32.totalorder %s1399_s24, %s1482_s3 }
 0x166   : > { %p1083_p7 = scmp.lt.u32.totalorder %s1081_s27, %s1077_s29  ;;  %p1085_p4 = scmp.lt.u32.totalorder %s1077_s29, %s1399_s24 }
 0x167   : > { %p1079_p1 = pnand %p1078_p9, %p1315_p10 }
 0x168   : > { %p1084_p13 = por %p1083_p7, %p1082_p3 }
 0x169   : > { %p1080_p2 = pneg %p1079_p1 }
 0x16a   : > { %p1086_p6 = por %p1085_p4, %p1084_p13 }
 0x16c   : > { %p1087_p8 = pnand %p1086_p6, %p1080_p2 }
 0x16e   : > { %1090 = shalt.err (!%p1087_p8)
}
 0x16f   : > { %s1191_s28 = smov 384   ;;  %s1192_s13 = smov 24  }
 0x170   : > { %926 = dma.vmem_to_hbm [thread:$0]  (%p1315_p10), %s1393_s21, 768, %s1399_s24, %s596_s30, %s1191_s28, %s1191_s28, %s1192_s13  }
 0x171   : > { %s792_s6 = sshll.u32 %s1371_s7, 3  ;;  %s797_s9 = sshll.u32 %s1173_s18, 7 }
 0x172   : > { %s294_s11 = scalar_lea.vmem [#allocation9], %s792_s6  ;;  %s1430_s25 = scalar_lea.hbm %s1483_s4, %s797_s9 }
 0x173   : > { %s634_s12 = sshll.u32 %s294_s11, 4  ;;  %s601_s21 = scalar_lea.sflag [#allocation10], %s1371_s7  ;;  %s1432_s12 = int_to_ptr.vmem [resolvable:$true] %s634_s12 }
 0x174   : > { %s1091_s24 = scalar_lea.vmem %s1432_s12, 128  ;;  %s1193_s18 = smov [#allocation9]  }
 0x175   : > { %p1092_p12 = scmp.ne.s32.totalorder %s1432_s12, %s1091_s24  ;;  %s1095_s30 = sshll.u32 %s1193_s18, 4  ;;  %s1096_s30 = int_to_ptr.vmem [resolvable:$false] %s1095_s30 }
 0x176   : > { %s1097_s27 = scalar_lea.vmem %s1096_s30, 256  ;;  %p1098_p5 = scmp.lt.s32.totalorder %s1432_s12, %s1096_s30 }
 0x177   : > { %p1093_p11 = pnand %p1092_p12, %p1315_p10  ;;  %p1099_p9 = scmp.lt.s32.totalorder %s1097_s27, %s1091_s24 }
 0x179   : > { %p1094_p0 = pneg %p1093_p11  ;;  %p1100_p1 = por %p1099_p9, %p1098_p5 }
 0x17b   : > { %p1101_p2 = pnand %p1100_p1, %p1094_p0 }
 0x1eb   : > { %v582_v42 = vpop.xlane.xlu0 %581 }
 0x1ef   : > { %v586_v43 = vpop.xlane.xlu0 %585 }
 0x1f0   : > { %v587_v44 = vmax.f32 %v582_v42, %v586_v43 }
 0x1f2   : > { %v588_v45 = vrot.slane %v587_v44, 4 }
 0x1f4   : > { %v589_v46 = vmax.f32 %v587_v44, %v588_v45 }
 0x1f6   : > { %v590_v47 = vrot.slane %v589_v46, 2 }
 0x1f8   : > { %v591_v48 = vmax.f32 %v589_v46, %v590_v47 }
 0x1fa   : > { %v592_v49 = vrot.slane %v591_v48, 1 }
 0x1fc   : > { %v593_v50 = vmax.f32 %v591_v48, %v592_v49 }
 0x1fe   : > { %594 = vst [vmem:[%s294_s11] sm:$0xff] %v593_v50 }
 0x1ff   : > { %1104 = shalt.err (!%p1101_p2)
}
 0x200   : > { %s1105_s7 = scalar_lea.hbm %s1430_s25, 128  ;;  %s1109_s28 = scalar_lea.hbm %s1483_s4, 256 }
 0x201   : > { %p1106_p3 = scmp.ne.s32.totalorder %s1430_s25, %s1105_s7  ;;  %p1110_p4 = scmp.lt.u32.totalorder %s1430_s25, %s1483_s4 }
 0x202   : > { %p1111_p6 = scmp.lt.u32.totalorder %s1109_s28, %s1105_s7  ;;  %p1113_p12 = scmp.lt.u32.totalorder %s1105_s7, %s1430_s25 }
 0x203   : > { %p1107_p7 = pnand %p1106_p3, %p1315_p10 }
 0x204   : > { %p1112_p8 = por %p1111_p6, %p1110_p4 }
 0x205   : > { %p1108_p13 = pneg %p1107_p7 }
 0x206   : > { %p1114_p11 = por %p1113_p12, %p1112_p8 }
 0x208   : > { %p1115_p0 = pnand %p1114_p11, %p1108_p13 }
 0x20a   : > { %1118 = shalt.err (!%p1115_p0)
}
 0x20b   : > { %927 = dma.vmem_to_hbm [thread:$0]  (%p1315_p10), %s1432_s12, 128, %s1430_s25, %s601_s21  }
 0x20c PF: > { %s646_s9 = sand.u32 1, %s1161_s15   ;;  %p1501_p5 = scmp.ne.s32.totalorder %s1491_s26, 0 }
 0x20d   : > { %p1502_p9 = scmp.ge.s32.totalorder %s1181_s20, 2  ;;  %s647_s11 = scalar_lea.sflag [#allocation5], %s646_s9 }
 0x20f   : > { %p939_p1 = pnand %p1502_p9, %p1501_p5 }
 0x211   : > { %1152 = dma.done.wait (!%p939_p1), %s647_s11, 768  }
 0x212   : > { %1154 = vsyncadd (!%p939_p1), %s647_s11, 4294966528  ;;  %s656_s29 = scalar_lea.sflag [#allocation10], %s646_s9 }
 0x213   : > { %1156 = dma.done.wait (!%p939_p1), %s656_s29, 128  }
 0x214   : > { %1158 = vsyncadd (!%p939_p1), %s656_s29, 4294967168  ;;  %s25_s20 = sadd.s32 1, %s1181_s20   ;;  %s1503_s15 = smov %s1165_s16 }
 0x215   : > { %p22_p2 = scmp.ge.s32.totalorder %s25_s20, 4   ;;  %s1504_s16 = smov %s1169_s17 }
 0x216   : > { %s1505_s17 = smov %s1324_s10  ;;  %s1506_s18 = smov %s1177_s19 }
 0x217   : > { %s1507_s19 = smov %s1509_s5  ;;  %24 = sbr.rel (!%p22_p2) target bundleno = 9 (0x9), region = 110 }
 0x21e   :  { %661 = vsyncpa [#allocation4], 1 }
 0x21f   :  { %663 = vsyncpa [#allocation4 + $0x1], 1 }
 0x220   :  { %664 = vsyncpa [#allocation7], 1 }
 0x221   :  { %665 = vsyncpa [#allocation5], 1 }
 0x222   :  { %667 = vsyncpa [#allocation5 + $0x1], 1 }
 0x223   :  { %668 = vsyncpa [#allocation10], 1 }
 0x224   :  { %670 = vsyncpa [#allocation10 + $0x1], 1 }

</bundles_post_ra>
